<compile_context>
chip_gen: v5e
topology: v5e:2x2
jax: 0.10.0
libtpu: 0.0.40
codegen_flags: <defaults>
</compile_context>

<pallas_src>
import functools

import jax
import jax.numpy as jnp
from jax.experimental import pallas as pl
from jax.experimental.pallas import tpu as pltpu


def _cd_kernel(x_ref, w1t_ref, b1_ref, w2t_ref, b2_ref, o_ref):
    """Fused Siamese 1x1-conv change-detection head on lane-dense pixel tiles.

    Channels on sublanes, pixels on lanes:
      x_ref   : (2, nb, C, TL)   pixel tiles of the two input images (bf16/f32)
      w1t_ref : (HID, C)         shared branch weights (transposed, bf16/f32)
      b1_ref  : (HID, 1)         f32
      w2t_ref : (C_OUT, HID)     classifier weights (transposed, f32)
      b2_ref  : (C_OUT, 1)       f32
      o_ref   : (nb, C_OUT, TL)  change-map logits tile
    """
    nb = x_ref.shape[1]
    w1t = w1t_ref[...]            # fed to the MXU in its storage dtype
    b1 = b1_ref[...]              # f32
    w2t = w2t_ref[...]            # f32
    b2 = b2_ref[...]              # f32

    # nb is a small static block dim (<= 8): short unrolled loop.
    for n in range(nb):
        x0 = x_ref[0, n]          # (C, TL) -- no upcast; MXU accumulates in f32
        x1 = x_ref[1, n]          # (C, TL)
        f0 = jnp.maximum(
            jnp.dot(w1t, x0, preferred_element_type=jnp.float32) + b1, 0.0)
        f1 = jnp.maximum(
            jnp.dot(w1t, x1, preferred_element_type=jnp.float32) + b1, 0.0)
        diff = jnp.abs(f0 - f1)                       # (HID, TL), f32
        out = jnp.dot(w2t, diff,
                      preferred_element_type=jnp.float32) + b2  # (C_OUT, TL)
        o_ref[n] = out.astype(o_ref.dtype)


@functools.partial(jax.jit, static_argnames=("tile_l", "use_bf16"))
def cd_model_output_wrapper(x, params, *, tile_l=8192, use_bf16=True):
    """JAX/Pallas equivalent of CDModelOutputWrapper.forward.

    x      : stacked pair of NCHW images, shape [2, B, C, H, W]
             (x[0] and x[1] mirror the PyTorch `x[0], x[1]` indexing)
    params : dict with w1 [C, HID], b1 [HID], w2 [HID, C_OUT], b2 [C_OUT]
    returns: change-map logits, NCHW [B, C_out, H, W]  ( == model(...)[-1] )
    """
    pair, B, C, H, W = x.shape
    assert pair == 2, "expected a stacked image pair on the leading axis"
    HW = H * W
    w1, b1, w2, b2 = params["w1"], params["b1"], params["w2"], params["b2"]
    hid = w1.shape[1]
    c_out = w2.shape[1]
    out_dtype = x.dtype

    # Pure reshape (H*W already contiguous in NCHW) -- no big-tensor transpose.
    x_flat = x.reshape(2, B, C, HW)
    store_dtype = jnp.bfloat16 if use_bf16 else x.dtype
    if x_flat.dtype != store_dtype:
        x_flat = x_flat.astype(store_dtype)   # halves HBM traffic (memory-bound)
    itemsize = jnp.dtype(store_dtype).itemsize

    # ---- lane (pixel) tiling -------------------------------------------------
    m = pl.cdiv(HW, 128)                      # number of 128-lane pixel blocks
    # Cap: one input block <= ~2 MiB (tiny vs VMEM even double-buffered).
    cap_from_vmem = max(128, (((2 << 20) // (2 * C * itemsize)) // 128) * 128)
    tl_cap = max(128, min((tile_l // 128) * 128, cap_from_vmem))
    best_k = 1                                # largest 128-multiple divisor <= cap
    for k in range(1, m + 1):
        if m % k == 0 and 128 * k <= tl_cap:
            best_k = k
    tl = 128 * best_k
    HW_pad = 128 * m
    # v7x megacore: guarantee >= 2 'parallel' grid steps even when B == 1.
    if B == 1 and HW_pad == tl and m >= 2:
        tl = 128 * ((m + 1) // 2)
        HW_pad = 2 * tl
    n_lane = HW_pad // tl

    if HW_pad != HW:
        # Lane-dense padding: every store stays unmasked; padded pixels sliced off.
        x_flat = jnp.pad(x_flat, ((0, 0), (0, 0), (0, 0), (0, HW_pad - HW)))

    # ---- batch blocking (amortize per-step overhead when tiles are tiny) ----
    step_in_bytes = 2 * C * tl * itemsize
    nb = 1
    if B > 1 and step_in_bytes < (512 << 10):
        for cand in range(min(B, 8), 1, -1):
            if B % cand:
                continue
            if cand * step_in_bytes > (2 << 20):
                continue
            if (B // cand) * n_lane >= 2:     # keep >= 2 parallel steps (megacore)
                nb = cand
                break
    grid = (B // nb, n_lane)

    # Tiny weight transposes / reshapes (negligible cost). Branch weights share
    # the storage dtype so the MXU consumes bf16 x bf16 directly; biases and
    # the 2nd-stage weights stay f32 (tiny, keeps elementwise math in f32).
    w1t = jnp.transpose(w1).astype(store_dtype)      # (HID, C)
    w2t = jnp.transpose(w2).astype(jnp.float32)      # (C_OUT, HID)
    b1c = b1.reshape(hid, 1).astype(jnp.float32)
    b2c = b2.reshape(c_out, 1).astype(jnp.float32)

    n_pix = B * HW_pad
    cost = pl.CostEstimate(
        flops=2 * n_pix * (2 * C * hid + hid * c_out) + 4 * n_pix * hid,
        transcendentals=0,
        bytes_accessed=(2 * B * C * HW_pad * itemsize
                        + C * hid * itemsize
                        + (hid + hid * c_out + c_out) * 4
                        + B * c_out * HW_pad * jnp.dtype(out_dtype).itemsize),
    )

    out_flat = pl.pallas_call(
        _cd_kernel,
        out_shape=jax.ShapeDtypeStruct((B, c_out, HW_pad), out_dtype),
        grid_spec=pltpu.PrefetchScalarGridSpec(
            num_scalar_prefetch=0,
            grid=grid,
            in_specs=[
                # Single stacked input: both images of nb batch rows x one lane tile.
                pl.BlockSpec((2, nb, C, tl), lambda b, l: (0, b, 0, l)),
                pl.BlockSpec((hid, C), lambda b, l: (0, 0)),
                pl.BlockSpec((hid, 1), lambda b, l: (0, 0)),
                pl.BlockSpec((c_out, hid), lambda b, l: (0, 0)),
                pl.BlockSpec((c_out, 1), lambda b, l: (0, 0)),
            ],
            out_specs=pl.BlockSpec((nb, c_out, tl), lambda b, l: (b, 0, l)),
        ),
        compiler_params=pltpu.CompilerParams(
            dimension_semantics=("parallel", "parallel"),
            vmem_limit_bytes=32 * 1024 * 1024,
        ),
        cost_estimate=cost,
    )(x_flat, w1t, b1c, w2t, b2c)

    if HW_pad != HW:
        out_flat = out_flat[:, :, :HW]
    # (B, C_out, H*W) -> (B, C_out, H, W): pure reshape, no transpose.
    return out_flat.reshape(B, c_out, H, W)


def _reference(x, params):
    """Pure-JAX f32 reference for correctness checking."""
    x0, x1 = x[0], x[1]
    w1, b1, w2, b2 = params["w1"], params["b1"], params["w2"], params["b2"]

    def branch(img):  # NCHW 1x1 conv == einsum over the channel axis
        f = jnp.einsum("bchw,cd->bdhw", img, w1) + b1[None, :, None, None]
        return jnp.maximum(f, 0.0)

    f0, f1 = branch(x0), branch(x1)
    diff = jnp.abs(f0 - f1)
    out = jnp.einsum("bdhw,dk->bkhw", diff, w2) + b2[None, :, None, None]
    return out  # == model(x0, x1)[-1]


if __name__ == "__main__":
    key = jax.random.PRNGKey(0)
    k_x0, k_x1, k_w1, k_b1, k_w2, k_b2 = jax.random.split(key, 6)

    B, C, H, W = 2, 4, 16, 16
    HID, C_OUT = 32, 2

    x0 = jax.random.normal(k_x0, (B, C, H, W), dtype=jnp.float32)
    x1 = jax.random.normal(k_x1, (B, C, H, W), dtype=jnp.float32)
    x = jnp.stack([x0, x1], axis=0)  # matches the PyTorch x[0], x[1] indexing

    params = {
        "w1": jax.random.normal(k_w1, (C, HID), dtype=jnp.float32) * 0.1,
        "b1": jax.random.normal(k_b1, (HID,), dtype=jnp.float32) * 0.1,
        "w2": jax.random.normal(k_w2, (HID, C_OUT), dtype=jnp.float32) * 0.1,
        "b2": jax.random.normal(k_b2, (C_OUT,), dtype=jnp.float32) * 0.1,
    }

    ref = _reference(x, params)

    # Default fast path: bf16 storage / bf16 MXU operands, f32 accumulation.
    out = jax.block_until_ready(cd_model_output_wrapper(x, params))
    assert out.shape == (B, C_OUT, H, W), out.shape
    assert jnp.allclose(out, ref, atol=3e-2, rtol=3e-2), "bf16 path mismatch"

    # Full-f32 path, tight tolerance.
    out_f32 = jax.block_until_ready(
        cd_model_output_wrapper(x, params, use_bf16=False))
    assert jnp.allclose(out_f32, ref, atol=1e-4, rtol=1e-4), "f32 path mismatch"

    # Non-128-multiple pixel count (H*W = 100): exercises lane padding + slice.
    x_small = x[:, :1, :, :10, :10]
    ref_small = _reference(x_small, params)
    out_small = jax.block_until_ready(
        cd_model_output_wrapper(x_small, params, use_bf16=False))
    assert jnp.allclose(out_small, ref_small, atol=1e-4, rtol=1e-4), \
        "padded path mismatch"

    print("KERNEL_OK")
</pallas_src>

<mosaic_0001>
module attributes {stable_mosaic.version = 11 : i64} {
  func.func @_cd_kernel(%arg0: i32, %arg1: i32, %arg2: memref<2x1x4x256xbf16, #tpu.memory_space<vmem>>, %arg3: memref<32x4xbf16, #tpu.memory_space<vmem>>, %arg4: memref<32x1xf32, #tpu.memory_space<vmem>>, %arg5: memref<2x32xf32, #tpu.memory_space<vmem>>, %arg6: memref<2x1xf32, #tpu.memory_space<vmem>>, %arg7: memref<1x2x256xf32, #tpu.memory_space<vmem>>) attributes {dimension_semantics = [#tpu.dimension_semantics<parallel>, #tpu.dimension_semantics<parallel>], iteration_bounds = array<i64: 2, 1>, scalar_prefetch = 0 : i64, scratch_operands = 0 : i64, tpu.core_type = #tpu.core_type<tc>, window_params = [{transform_indices = @transform_0, window_bounds = array<i64: 2, 1, 4, 256>}, {pipeline_mode = #tpu.pipeline_mode<synchronous>, transform_indices = @transform_1, window_bounds = array<i64: 32, 4>}, {pipeline_mode = #tpu.pipeline_mode<synchronous>, transform_indices = @transform_2, window_bounds = array<i64: 32, 1>}, {pipeline_mode = #tpu.pipeline_mode<synchronous>, transform_indices = @transform_3, window_bounds = array<i64: 2, 32>}, {pipeline_mode = #tpu.pipeline_mode<synchronous>, transform_indices = @transform_4, window_bounds = array<i64: 2, 1>}, {transform_indices = @transform_5, window_bounds = array<i64: 1, 2, 256>}]} {
    %c0 = arith.constant 0 : index
    %c0_0 = arith.constant 0 : index
    %0 = vector.load %arg3[%c0, %c0_0] : memref<32x4xbf16, #tpu.memory_space<vmem>>, vector<32x4xbf16>
    %c0_1 = arith.constant 0 : index
    %c0_2 = arith.constant 0 : index
    %1 = vector.load %arg4[%c0_1, %c0_2] : memref<32x1xf32, #tpu.memory_space<vmem>>, vector<32x1xf32>
    %c0_3 = arith.constant 0 : index
    %c0_4 = arith.constant 0 : index
    %2 = vector.load %arg5[%c0_3, %c0_4] : memref<2x32xf32, #tpu.memory_space<vmem>>, vector<2x32xf32>
    %c0_5 = arith.constant 0 : index
    %c0_6 = arith.constant 0 : index
    %3 = vector.load %arg6[%c0_5, %c0_6] : memref<2x1xf32, #tpu.memory_space<vmem>>, vector<2x1xf32>
    %c0_7 = arith.constant 0 : index
    %c0_8 = arith.constant 0 : index
    %c0_9 = arith.constant 0 : index
    %c0_10 = arith.constant 0 : index
    %4 = vector.load %arg2[%c0_7, %c0_8, %c0_9, %c0_10] : memref<2x1x4x256xbf16, #tpu.memory_space<vmem>>, vector<1x1x4x256xbf16>
    %5 = vector.shape_cast %4 : vector<1x1x4x256xbf16> to vector<4x256xbf16>
    %c1 = arith.constant 1 : index
    %c0_11 = arith.constant 0 : index
    %c0_12 = arith.constant 0 : index
    %c0_13 = arith.constant 0 : index
    %6 = vector.load %arg2[%c1, %c0_11, %c0_12, %c0_13] : memref<2x1x4x256xbf16, #tpu.memory_space<vmem>>, vector<1x1x4x256xbf16>
    %7 = vector.shape_cast %6 : vector<1x1x4x256xbf16> to vector<4x256xbf16>
    %cst = arith.constant dense<0.000000e+00> : vector<32x256xf32>
    %8 = tpu.matmul %0, %5, %cst {dimension_numbers = #tpu.dot_dimension_numbers<[1], [0], [0], [1], [0, 0, 1, 1], [], []>} : vector<32x4xbf16>, vector<4x256xbf16>, vector<32x256xf32> -> vector<32x256xf32>
    %9 = vector.broadcast %1 : vector<32x1xf32> to vector<32x256xf32>
    %10 = arith.addf %8, %9 : vector<32x256xf32>
    %cst_14 = arith.constant 0.000000e+00 : f32
    %11 = vector.broadcast %cst_14 : f32 to vector<32x256xf32>
    %12 = arith.maximumf %10, %11 : vector<32x256xf32>
    %cst_15 = arith.constant dense<0.000000e+00> : vector<32x256xf32>
    %13 = tpu.matmul %0, %7, %cst_15 {dimension_numbers = #tpu.dot_dimension_numbers<[1], [0], [0], [1], [0, 0, 1, 1], [], []>} : vector<32x4xbf16>, vector<4x256xbf16>, vector<32x256xf32> -> vector<32x256xf32>
    %14 = vector.broadcast %1 : vector<32x1xf32> to vector<32x256xf32>
    %15 = arith.addf %13, %14 : vector<32x256xf32>
    %cst_16 = arith.constant 0.000000e+00 : f32
    %16 = vector.broadcast %cst_16 : f32 to vector<32x256xf32>
    %17 = arith.maximumf %15, %16 : vector<32x256xf32>
    %18 = arith.subf %12, %17 : vector<32x256xf32>
    %19 = math.absf %18 : vector<32x256xf32>
    %cst_17 = arith.constant dense<0.000000e+00> : vector<2x256xf32>
    %20 = tpu.matmul %2, %19, %cst_17 {dimension_numbers = #tpu.dot_dimension_numbers<[1], [0], [0], [1], [0, 0, 1, 1], [], []>} : vector<2x32xf32>, vector<32x256xf32>, vector<2x256xf32> -> vector<2x256xf32>
    %21 = vector.broadcast %3 : vector<2x1xf32> to vector<2x256xf32>
    %22 = arith.addf %20, %21 : vector<2x256xf32>
    %c0_18 = arith.constant 0 : index
    %c0_19 = arith.constant 0 : index
    %c0_20 = arith.constant 0 : index
    %23 = vector.load %arg7[%c0_18, %c0_19, %c0_20] : memref<1x2x256xf32, #tpu.memory_space<vmem>>, vector<1x2x256xf32>
    %24 = vector.shape_cast %23 : vector<1x2x256xf32> to vector<2x256xf32>
    %25 = vector.shape_cast %22 : vector<2x256xf32> to vector<1x2x256xf32>
    tpu.vector_store %arg7[%c0_18, %c0_19, %c0_20], %25 {strides = array<i32>} : memref<1x2x256xf32, #tpu.memory_space<vmem>>, vector<1x2x256xf32>,
    return
  }
  func.func @transform_0(%arg0: i32, %arg1: i32) -> (i32, i32, i32, i32) {
    %c0_i32 = arith.constant 0 : i32
    %c0_i32_0 = arith.constant 0 : i32
    %c0_i32_1 = arith.constant 0 : i32
    return %c0_i32, %arg0, %c0_i32_0, %arg1 : i32, i32, i32, i32
  }
  func.func @transform_1(%arg0: i32, %arg1: i32) -> (i32, i32) {
    %c0_i32 = arith.constant 0 : i32
    %c0_i32_0 = arith.constant 0 : i32
    %c0_i32_1 = arith.constant 0 : i32
    return %c0_i32, %c0_i32_0 : i32, i32
  }
  func.func @transform_2(%arg0: i32, %arg1: i32) -> (i32, i32) {
    %c0_i32 = arith.constant 0 : i32
    %c0_i32_0 = arith.constant 0 : i32
    %c0_i32_1 = arith.constant 0 : i32
    return %c0_i32, %c0_i32_0 : i32, i32
  }
  func.func @transform_3(%arg0: i32, %arg1: i32) -> (i32, i32) {
    %c0_i32 = arith.constant 0 : i32
    %c0_i32_0 = arith.constant 0 : i32
    %c0_i32_1 = arith.constant 0 : i32
    return %c0_i32, %c0_i32_0 : i32, i32
  }
  func.func @transform_4(%arg0: i32, %arg1: i32) -> (i32, i32) {
    %c0_i32 = arith.constant 0 : i32
    %c0_i32_0 = arith.constant 0 : i32
    %c0_i32_1 = arith.constant 0 : i32
    return %c0_i32, %c0_i32_0 : i32, i32
  }
  func.func @transform_5(%arg0: i32, %arg1: i32) -> (i32, i32, i32) {
    %c0_i32 = arith.constant 0 : i32
    %c0_i32_0 = arith.constant 0 : i32
    return %arg0, %c0_i32, %arg1 : i32, i32, i32
  }
}

</mosaic_0001>

<bundles_post_ra>
// kernel: cd_model_output_wrapper.1
= control target key start
LH: loop header
LB: loop body
LE: loop exit
PB: predicated region body
PF: predicated region fallthrough
CT: control target
= control target key end

     0   :  { %s773_s18 = smov 0   ;;  %s775_s19 = smov 0   ;;  %s876_s0 = inlined_call_operand.vmem [shape: bf16[2,2,4,256], index: 0, kind: input, shape index: {}]   ;;  %s877_s1 = inlined_call_operand.vmem [shape: bf16[32,4], index: 1, kind: input, shape index: {}]   ;;  %s878_s2 = inlined_call_operand.vmem [shape: f32[32,1], index: 2, kind: input, shape index: {}]   ;;  %s879_s3 = inlined_call_operand.vmem [shape: f32[2,32], index: 3, kind: input, shape index: {}]   ;;  %s880_s4 = inlined_call_operand.vmem [shape: f32[2,1], index: 4, kind: input, shape index: {}]   ;;  %s881_s5 = inlined_call_operand.vmem [shape: f32[2,2,256], index: 5, kind: output, shape index: {}]  }
   0x1   :  { %s777_s20 = smov 0   ;;  %s779_s21 = smov 0  }
   0x2   :  { %s781_s22 = smov 0  }
   0x3 LB: > { %s27_s23 = sadd.s32 1, %s736_s21  ;;  %p43_p1 = scmp.ne.s32.totalorder %s728_s19, %s724_s18  ;;  %s740_s22 = sphi %s781_s22, %s15_s22   ;;  %s736_s21 = sphi %s779_s21, %s885_s21   ;;  %s732_s20 = sphi %s777_s20, %s884_s20   ;;  %s728_s19 = sphi %s775_s19, %s883_s19   ;;  %s724_s18 = sphi %s773_s18, %s882_s18  }
   0x4   : > { %p29_p0 = scmp.ge.s32.totalorder %s27_s23, 2  ;;  %p44_p2 = scmp.eq.s32.totalorder %s740_s22, 0 }
   0x5   : > { %s36_s25 = sadd.s32 1, %s728_s19  ;;  %p625_p5 = scmp.ge.s32.totalorder %s740_s22, 2 }
   0x6   : > { %s887_s23 = smov (%p29_p0, %s27_s23), 0  ;;  %p45_p3 = por %p44_p2, %p43_p1 }
   0x7   : > { %s31_s24 = ssub.s32 %s736_s21, %s887_s23  ;;  %193 = sbr.rel (%p625_p5) target bundleno = 18 (0x12), region = 32 }
   0x8   : > { %p34_p4 = scmp.eq.s32.totalorder %s31_s24, 0 }
   0xa   : > { %s808_s26 = scalar_select %p34_p4, %s728_s19, %s36_s25  }
   0xc   : > { %196 = sbr.rel (!%p45_p3) target bundleno = 18 (0x12), region = 36  ;;  %s198_s27 = sand.u32 (%p45_p3), 1, %s728_s19  }
   0xd   : > { %s654_s28 = sshll.u32 (%p45_p3), %s736_s21, 2  ;;  %s626_s29 = sshll.u32 (%p45_p3), %s198_s27, 3 }
   0xe   : > { %s205_s7 = scalar_lea.vmem (%p45_p3), %s876_s0, %s654_s28  ;;  %s200_s8 = scalar_lea.vmem (%p45_p3), [#allocation2], %s626_s29 }
   0xf   : > { %v222_v0 = vld [vmem:[%s205_s7] sm:$0xf] (%p45_p3)  ;;  %v224_v1 = vld [vmem:[%s205_s7 + $0x8] sm:$0xf] (%p45_p3) }
  0x10   : > { %223 = vst [vmem:[%s200_s8] sm:$0xf] (%p45_p3), %v222_v0 }
  0x11   : > { %225 = vst [vmem:[%s200_s8 + $0x4] sm:$0xf] %v224_v1 }
  0x12 PF: > { %p629_p6 = scmp.ge.s32.totalorder %s740_s22, 1  ;;  %p252_p7 = scmp.lt.s32.totalorder %s740_s22, 3 }
  0x14   : > { %p253_p8 = pnand %p629_p6, %p252_p7 }
  0x15   : > { %s259_s9 = sand.u32 (!%p253_p8), 1, %s724_s18   ;;  %p292_p9 = scmp.lt.s32.totalorder (!%p253_p8), %s732_s20, 1 }
  0x16   : > { %256 = sbr.rel (%p253_p8) target bundleno = 352 (0x160), region = 77  ;;  %s630_s12 = sshll.u32 (!%p253_p8), %s259_s9, 3 }
  0x17   : > { %s261_s13 = scalar_lea.vmem (!%p253_p8), [#allocation2], %s630_s12 }
  0x1b   : > { %v307_v2 = vld [vmem:[%s878_s2 + $0x8] sm:$0xff]  ;;  %v742_v3 = vmov 0   ;;  %v306_v5 = vld [vmem:[%s878_s2] sm:$0xff]  ;;  %v309_v6 = vld [vmem:[%s878_s2 + $0x18] sm:$0xff]  ;;  %vm356_vm0 = vcmask 1041408   ;;  %vm349_vm1 = vcmask 31744  }
  0x1c   : > { %700 = vset.pattern.permute.xlu1 %v742_v3  ;;  %699 = vset.pattern.permute.xlu0 %v742_v3  ;;  %v312_v4 = vld [vmem:[%s261_s13] sm:$0xf]  ;;  %v633_v7 = vld [vmem:[%s261_s13 + $0x4] sm:$0xf]  ;;  %v656_v12 = vld [vmem:[%s877_s1] sm:$0xff]  ;;  %vm482_vm2 = vcmask 261120  }
  0x1d   : > { %322 = vperm.xlu1 %700, %v307_v2   ;;  %701 = vset.pattern.permute.xlu2 %v742_v3  ;;  %346 = vst [vmem:[#allocation1] ss:$4 sm:$0xff] %v312_v4  ;;  %v308_v13 = vld [vmem:[%s878_s2 + $0x10] sm:$0xff]  ;;  %v657_v18 = vld [vmem:[%s877_s1 + $0x8] sm:$0xff]  ;;  %v311_v28 = vld [vmem:[%s880_s4] sm:$0x3] }
  0x1e   : > { %332 = vperm.xlu0 %699, %v309_v6   ;;  %479 = vperm.xlu2 %701, %v311_v28   ;;  %s889_s20 = smov (!%p292_p9, %s732_s20), 1 }
  0x1f   : > { %s655_s9 = sshll.u32 %s889_s20, 2 }
  0x20   : > { %s299_s12 = scalar_lea.vmem %s881_s5, %s655_s9 }
  0x24   : > { %v348_v8 = vld.sshfl [vmem:[#allocation1 + $0x8] sm:$0xff pattern:$0x73625140]  ;;  %v347_v9 = vld.sshfl [vmem:[#allocation1] sm:$0xff pattern:$0x73625140] }
  0x25   : > { %317 = vperm.xlu1 %700, %v306_v5   ;;  %v359_v10 = vsel %vm356_vm0, %v348_v8, 0  ;;  %v357_v11 = vsel %vm356_vm0, %v347_v9, 0  ;;  %408 = vst [vmem:[#allocation1] ss:$4 sm:$0xff] %v633_v7 }
  0x26   : > { %387 = vmatpush.bf16.msra.mxu1 %v359_v10  ;;  %368 = vmatpush.bf16.msra.mxu0 %v357_v11 }
  0x27   : > { %327 = vperm.xlu0 %699, %v308_v13  }
  0x29   : > { %644 = vmatmul.msk.bf16.vlgmr.msra.gmra.mxu1 %vm349_vm1, %v656_v12  ;;  %642 = vmatmul.msk.bf16.vlgmr.msra.gmra.mxu0 %vm349_vm1, %v656_v12 }
  0x2c   : > { %v409_v14 = vld.sshfl [vmem:[#allocation1] sm:$0xff pattern:$0x73625140]  ;;  %v410_v15 = vld.sshfl [vmem:[#allocation1 + $0x8] sm:$0xff pattern:$0x73625140] }
  0x2d   : > { %v411_v16 = vsel %vm356_vm0, %v409_v14, 0  ;;  %v413_v17 = vsel %vm356_vm0, %v410_v15, 0 }
  0x2e   : > { %422 = vmatpush.bf16.msra.mxu2 %v411_v16  ;;  %441 = vmatpush.bf16.msra.mxu3 %v413_v17 }
  0x31   : > { %646 = vmatmul.msk.bf16.vlgmr.msra.gmra.mxu2 %vm349_vm1, %v656_v12  ;;  %648 = vmatmul.msk.bf16.vlgmr.msra.gmra.mxu3 %vm349_vm1, %v656_v12 }
  0x39   : > { %645 = vmatmul.msk.bf16.gmra.mxu1 %vm349_vm1, %v657_v18  ;;  %643 = vmatmul.msk.bf16.gmra.mxu0 %vm349_vm1, %v657_v18 }
  0x41   : > { %647 = vmatmul.msk.bf16.gmra.mxu2 %vm349_vm1, %v657_v18  ;;  %649 = vmatmul.msk.bf16.gmra.mxu3 %vm349_vm1, %v657_v18 }
  0x8f   : > { %v323_v29 = vpop.permute.xlu1 %322 }
  0x90   : > { %v333_v25 = vpop.permute.xlu0 %332 }
  0x97   : > { %v318_v35 = vpop.permute.xlu1 %317 }
  0x99   : > { %v328_v34 = vpop.permute.xlu0 %327 }
  0xa6   : > { %v389_v19 = vpop.f32.mrf.mxu1  ;;  %v370_v20 = vpop.f32.mrf.mxu0 }
  0xa7   : > { %v371_v42 = vadd.f32 %v370_v20, %v318_v35  ;;  %v390_v43 = vadd.f32 %v389_v19, %v318_v35 }
  0xa9   : > { %v399_v62 = vmax.f32 %v371_v42, 0.0  ;;  %v400_v63 = vmax.f32 %v390_v43, 0.0 }
  0xae   : > { %v391_v21 = vpop.f32.mrf.mxu1  ;;  %v372_v22 = vpop.f32.mrf.mxu0 }
  0xaf   : > { %v392_v46 = vadd.f32 %v391_v21, %v323_v29  ;;  %v373_v47 = vadd.f32 %v372_v22, %v323_v29 }
  0xb1   : > { %v402_v4 = vmax.f32 %v392_v46, 0.0  ;;  %v401_v7 = vmax.f32 %v373_v47, 0.0 }
  0xb4   : > { %v424_v23 = vpop.f32.mrf.mxu2  ;;  %v443_v24 = vpop.f32.mrf.mxu3 }
  0xb5   : > { %v425_v50 = vadd.f32 %v424_v23, %v318_v35  ;;  %v444_v51 = vadd.f32 %v443_v24, %v318_v35  ;;  %v310_v24 = vld [vmem:[%s879_s3] sm:$0x3] }
  0xb6   : > { %v394_v30 = vpop.f32.mrf.mxu1  ;;  %v375_v31 = vpop.f32.mrf.mxu0 }
  0xb7   : > { %v376_v36 = vadd.f32 %v375_v31, %v328_v34  ;;  %v395_v37 = vadd.f32 %v394_v30, %v328_v34  ;;  %v453_v5 = vmax.f32 %v425_v50, 0.0  ;;  %v454_v6 = vmax.f32 %v444_v51, 0.0 }
  0xb9   : > { %v403_v54 = vmax.f32 %v376_v36, 0.0  ;;  %v404_v55 = vmax.f32 %v395_v37, 0.0  ;;  %v461_v16 = vsub.f32 %v399_v62, %v453_v5  ;;  %v462_v19 = vsub.f32 %v400_v63, %v454_v6 }
  0xbb   : > { %v469_v22 = vand.u32 2147483647, %v461_v16  ;;  %v470_v23 = vand.u32 2147483647, %v462_v19 }
  0xbc   : > { %v426_v26 = vpop.f32.mrf.mxu2  ;;  %v445_v27 = vpop.f32.mrf.mxu3 }
  0xbd   : > { %v427_v44 = vadd.f32 %v426_v26, %v323_v29  ;;  %v446_v45 = vadd.f32 %v445_v27, %v323_v29 }
  0xbe   : > { %v396_v38 = vpop.f32.mrf.mxu1  ;;  %v377_v39 = vpop.f32.mrf.mxu0 }
  0xbf   : > { %v397_v48 = vadd.f32 %v396_v38, %v333_v25  ;;  %v378_v49 = vadd.f32 %v377_v39, %v333_v25  ;;  %v455_v60 = vmax.f32 %v427_v44, 0.0  ;;  %v456_v61 = vmax.f32 %v446_v45, 0.0 }
  0xc1   : > { %v406_v0 = vmax.f32 %v397_v48, 0.0  ;;  %v405_v1 = vmax.f32 %v378_v49, 0.0  ;;  %v463_v14 = vsub.f32 %v401_v7, %v455_v60  ;;  %v464_v15 = vsub.f32 %v402_v4, %v456_v61 }
  0xc3   : > { %v471_v20 = vand.u32 2147483647, %v463_v14  ;;  %v472_v21 = vand.u32 2147483647, %v464_v15 }
  0xc4   : > { %v429_v32 = vpop.f32.mrf.mxu2  ;;  %v448_v33 = vpop.f32.mrf.mxu3 }
  0xc5   : > { %v430_v40 = vadd.f32 %v429_v32, %v328_v34  ;;  %v449_v41 = vadd.f32 %v448_v33, %v328_v34 }
  0xc7   : > { %v457_v56 = vmax.f32 %v430_v40, 0.0  ;;  %v458_v57 = vmax.f32 %v449_v41, 0.0 }
  0xc9   : > { %v465_v10 = vsub.f32 %v403_v54, %v457_v56  ;;  %v466_v11 = vsub.f32 %v404_v55, %v458_v57 }
  0xcb   : > { %v473_v17 = vand.u32 2147483647, %v465_v10  ;;  %v474_v18 = vand.u32 2147483647, %v466_v11 }
  0xcc   : > { %v431_v52 = vpop.f32.mrf.mxu2  ;;  %v450_v53 = vpop.f32.mrf.mxu3 }
  0xcd   : > { %v432_v58 = vadd.f32 %v431_v52, %v333_v25  ;;  %v451_v59 = vadd.f32 %v450_v53, %v333_v25  ;;  %v480_v25 = vpop.permute.xlu2 %479 }
  0xcf   : > { %v459_v2 = vmax.f32 %v432_v58, 0.0  ;;  %v460_v3 = vmax.f32 %v451_v59, 0.0 }
  0xd1   : > { %v467_v8 = vsub.f32 %v405_v1, %v459_v2  ;;  %v468_v9 = vsub.f32 %v406_v0, %v460_v3 }
  0xd3   : > { %v475_v12 = vand.u32 2147483647, %v467_v8  ;;  %v476_v13 = vand.u32 2147483647, %v468_v9 }
  0xd5   : > { %498 = vmatpush.msrb.mxu0 %v475_v12  ;;  %518 = vmatpush.msrb.mxu1 %v476_v13 }
  0xd7   : > { %499 = vmatpush.msrb.mxu0 %v473_v17  ;;  %519 = vmatpush.msrb.mxu1 %v474_v18 }
  0xd9   : > { %500 = vmatpush.msrb.mxu0 %v471_v20  ;;  %520 = vmatpush.msrb.mxu1 %v472_v21 }
  0xdb   : > { %501 = vmatpush.msrb.mxu0 %v469_v22  ;;  %521 = vmatpush.msrb.mxu1 %v470_v23 }
  0xdc   : > { %651 = vmatmul.msk.f32.vlgmr.msrb.gmra.mxu1 %vm482_vm2, %v310_v24  ;;  %650 = vmatmul.msk.f32.vlgmr.msrb.gmra.mxu0 %vm482_vm2, %v310_v24 }
 0x159   : > { %v523_v26 = vpop.f32.mrf.mxu1  ;;  %v503_v27 = vpop.f32.mrf.mxu0 }
 0x15a   : > { %v524_v28 = vadd.f32 %v523_v26, %v480_v25  ;;  %v504_v30 = vadd.f32 %v503_v27, %v480_v25 }
 0x15c   : > { %v528_v29 = vrot.slane %v524_v28, 6 }
 0x15e   : > { %v529_v31 = vsel %vm356_vm0, %v504_v30, %v528_v29 }
 0x15f   : > { %531 = vst [vmem:[%s299_s12] sm:$0xf] %v529_v31 }
 0x160 PF: > { %s15_s22 = sadd.s32 1, %s740_s22   ;;  %s882_s18 = smov %s728_s19 }
 0x161   : > { %p12_p10 = scmp.ge.s32.totalorder %s15_s22, 4   ;;  %s883_s19 = smov %s808_s26 }
 0x162   : > { %s884_s20 = smov %s736_s21  ;;  %s885_s21 = smov %s887_s23 }
 0x163   :  { %14 = sbr.rel (!%p12_p10) target bundleno = 3 (0x3), region = 117 }

</bundles_post_ra>
